<compile_context>
chip_gen: v6e
topology: v6e:2x2x1
jax: 0.10.0
libtpu: 0.0.40
codegen_flags: <defaults>
</compile_context>

<pallas_src>
import math
import functools

import jax
import jax.numpy as jnp
from jax.experimental import pallas as pl
from jax.experimental.pallas import tpu as pltpu


# ----------------------------- kernels --------------------------------------


def _pe_add_kernel(x_ref, pe_ref, o_ref):
    """Eval-mode forward: out = x + pe[:S, :] (dropout is identity)."""
    y = x_ref[...].astype(jnp.float32) + pe_ref[...].astype(jnp.float32)
    o_ref[...] = y.astype(o_ref.dtype)


def _pe_add_dropout_kernel(x_ref, pe_ref, bits_ref, o_ref, *, p):
    """Training-mode forward: out = dropout(x + pe[:S, :], p).

    Inverted dropout: keep with prob (1-p), scale kept values by 1/(1-p).
    Random uint32 bits come in as a third operand, tiled identically to x,
    so the kernel lowers on real TPUs and under the TPU interpreter alike.
    """
    y = x_ref[...].astype(jnp.float32) + pe_ref[...].astype(jnp.float32)
    # drop iff uniform < p  <=>  bits < p * 2^32
    thresh = jnp.uint32(min(int(p * (2 ** 32)), 2 ** 32 - 1))
    keep = bits_ref[...] >= thresh
    scale = jnp.float32(1.0 / (1.0 - p))
    o_ref[...] = (y * jnp.where(keep, scale, jnp.float32(0.0))).astype(o_ref.dtype)


# --------------------------- parameter setup ---------------------------------


def make_pe_table(d_model, max_len=100, dtype=jnp.float32):
    """Deterministic positional-encoding buffer, identical to the PyTorch init."""
    position = jnp.arange(0, max_len, dtype=jnp.float32)[:, None]          # (max_len, 1)
    div_term = jnp.exp(
        jnp.arange(0, d_model, 2, dtype=jnp.float32) * (-math.log(10000.0) / d_model)
    )                                                                       # (d_model//2,)
    pe = jnp.zeros((max_len, d_model), dtype=jnp.float32)
    pe = pe.at[:, 0::2].set(jnp.sin(position * div_term) / 1000.0)
    pe = pe.at[:, 1::2].set(jnp.cos(position * div_term) / 1000.0)
    return pe.astype(dtype)


# ------------------------------ wrapper --------------------------------------

_MAX_TILE_ROWS = 512  # 512x128 f32 tile = 256 KiB; 4 streams x 2 buffers << 32 MiB scoped VMEM (v7x-safe)


def _lane_dense_view(S, D):
    """Pick a lane-dense 2-D view (R, W) of a (S, D) slab; W is 128 when possible."""
    total = S * D
    if total % 128 == 0:
        return total // 128, 128
    # TODO(synk): pad the trailing dim to a multiple of 128 for lane-dense stores
    # when S*D is not a multiple of 128; fall back to the natural layout here.
    return S, D


def positional_encoding_forward(x, pe, *, p=0.1, training=False, key=None):
    """Pallas forward pass.  x: (seq_len, d_model)."""
    S, D = x.shape
    pe_s = jax.lax.slice(pe, (0, 0), (S, D)).astype(x.dtype)   # pe[:x.size(0), :]

    # Lane-dense flatten: elementwise op, so any consistent reshape is legal.
    R, W = _lane_dense_view(S, D)
    x2 = x.reshape(R, W)
    pe2 = pe_s.reshape(R, W)

    tile_rows = R if R <= _MAX_TILE_ROWS else _MAX_TILE_ROWS
    grid = (pl.cdiv(R, tile_rows),)
    blk = (tile_rows, W)
    imap = lambda i: (i, 0)

    cparams = pltpu.CompilerParams(dimension_semantics=("parallel",))

    if training and p > 0.0:
        if key is None:
            key = jax.random.PRNGKey(0)
        bits = jax.random.bits(key, shape=(R, W), dtype=jnp.uint32)
        out2 = pl.pallas_call(
            functools.partial(_pe_add_dropout_kernel, p=float(p)),
            out_shape=jax.ShapeDtypeStruct((R, W), x.dtype),
            grid_spec=pl.GridSpec(
                grid=grid,
                in_specs=[
                    pl.BlockSpec(blk, imap),   # x tile
                    pl.BlockSpec(blk, imap),   # pe tile
                    pl.BlockSpec(blk, imap),   # random bits tile
                ],
                out_specs=pl.BlockSpec(blk, imap),
            ),
            compiler_params=cparams,
        )(x2, pe2, bits)
    else:
        out2 = pl.pallas_call(
            _pe_add_kernel,
            out_shape=jax.ShapeDtypeStruct((R, W), x.dtype),
            grid_spec=pl.GridSpec(
                grid=grid,
                in_specs=[
                    pl.BlockSpec(blk, imap),
                    pl.BlockSpec(blk, imap),
                ],
                out_specs=pl.BlockSpec(blk, imap),
            ),
            compiler_params=cparams,
        )(x2, pe2)

    return out2.reshape(S, D)


# ------------------------------- main ----------------------------------------


if __name__ == "__main__":
    p_drop = 0.1
    key = jax.random.PRNGKey(0)
    k_x, k_x2, k_drop = jax.random.split(key, 3)

    # --- small shape consistent with the module: (seq_len=8, d_model=32) ----
    d_model, seq_len = 32, 8
    pe = make_pe_table(d_model, max_len=100)
    x = jax.random.normal(k_x, (seq_len, d_model), dtype=jnp.float32)

    # Eval mode (dropout = identity): exact numerical check vs reference.
    out_eval = jax.block_until_ready(
        positional_encoding_forward(x, pe, p=p_drop, training=False))
    ref_eval = x + pe[:seq_len, :]
    assert out_eval.shape == (seq_len, d_model)
    assert jnp.allclose(out_eval, ref_eval, atol=1e-6, rtol=1e-6)

    # Training mode (inverted dropout): survivors == ref/(1-p), dropped == 0.
    out_train = jax.block_until_ready(
        positional_encoding_forward(x, pe, p=p_drop, training=True, key=k_drop))
    assert out_train.shape == (seq_len, d_model)
    scaled_ref = ref_eval / (1.0 - p_drop)
    ok = jnp.isclose(out_train, scaled_ref, atol=1e-5) | jnp.isclose(out_train, 0.0)
    assert bool(jnp.all(ok))

    # --- larger shape to exercise the multi-tile (grid > 1) pipelined path ---
    d_model2, seq_len2 = 2048, 64      # (64 * 2048) / 128 = 1024 rows -> 2 tiles of 512
    pe_big = make_pe_table(d_model2, max_len=100)
    x_big = jax.random.normal(k_x2, (seq_len2, d_model2), dtype=jnp.float32)
    out_big = jax.block_until_ready(
        positional_encoding_forward(x_big, pe_big, p=p_drop, training=False))
    ref_big = x_big + pe_big[:seq_len2, :]
    assert jnp.allclose(out_big, ref_big, atol=1e-6, rtol=1e-6)

    print("KERNEL_OK")
</pallas_src>

<mosaic_0001>
module attributes {stable_mosaic.version = 11 : i64} {
  func.func @_pe_add_kernel(%arg0: i32, %arg1: memref<2x128xf32, #tpu.memory_space<vmem>>, %arg2: memref<2x128xf32, #tpu.memory_space<vmem>>, %arg3: memref<2x128xf32, #tpu.memory_space<vmem>>) attributes {dimension_semantics = [#tpu.dimension_semantics<parallel>], iteration_bounds = array<i64: 1>, scalar_prefetch = 0 : i64, scratch_operands = 0 : i64, tpu.core_type = #tpu.core_type<tc>, window_params = [{transform_indices = @transform_0, window_bounds = array<i64: 2, 128>}, {transform_indices = @transform_1, window_bounds = array<i64: 2, 128>}, {transform_indices = @transform_2, window_bounds = array<i64: 2, 128>}]} {
    %c0 = arith.constant 0 : index
    %c0_0 = arith.constant 0 : index
    %0 = vector.load %arg1[%c0, %c0_0] : memref<2x128xf32, #tpu.memory_space<vmem>>, vector<2x128xf32>
    %c0_1 = arith.constant 0 : index
    %c0_2 = arith.constant 0 : index
    %1 = vector.load %arg2[%c0_1, %c0_2] : memref<2x128xf32, #tpu.memory_space<vmem>>, vector<2x128xf32>
    %2 = arith.addf %0, %1 : vector<2x128xf32>
    %c0_3 = arith.constant 0 : index
    %c0_4 = arith.constant 0 : index
    %3 = vector.load %arg3[%c0_3, %c0_4] : memref<2x128xf32, #tpu.memory_space<vmem>>, vector<2x128xf32>
    tpu.vector_store %arg3[%c0_3, %c0_4], %2 {strides = array<i32>} : memref<2x128xf32, #tpu.memory_space<vmem>>, vector<2x128xf32>,
    return
  }
  func.func @transform_0(%arg0: i32) -> (i32, i32) {
    %c0_i32 = arith.constant 0 : i32
    %c0_i32_0 = arith.constant 0 : i32
    return %arg0, %c0_i32 : i32, i32
  }
  func.func @transform_1(%arg0: i32) -> (i32, i32) {
    %c0_i32 = arith.constant 0 : i32
    %c0_i32_0 = arith.constant 0 : i32
    return %arg0, %c0_i32 : i32, i32
  }
  func.func @transform_2(%arg0: i32) -> (i32, i32) {
    %c0_i32 = arith.constant 0 : i32
    %c0_i32_0 = arith.constant 0 : i32
    return %arg0, %c0_i32 : i32, i32
  }
}

</mosaic_0001>

<bundles_post_ra>
// kernel: tpu_custom_call.1
= control target key start
LH: loop header
LB: loop body
LE: loop exit
PB: predicated region body
PF: predicated region fallthrough
CT: control target
= control target key end

     0   :  { %7 = vsyncpa [#allocation3], 0  ;;  %s152_s0 = inlined_call_operand.hbm [shape: f32[2,128], index: 0, kind: input, shape index: {}]   ;;  %s153_s1 = inlined_call_operand.hbm [shape: f32[2,128], index: 1, kind: input, shape index: {}]   ;;  %s154_s2 = inlined_call_operand.hbm [shape: f32[2,128], index: 2, kind: output, shape index: {}]  }
   0x1   :  { %8 = vsyncpa [#allocation6], 0 }
   0x2   :  { %9 = vsyncpa [#allocation4], 0  ;;  %s125_s9 = smov [#allocation2]   ;;  %s126_s11 = smov [#allocation5]  }
   0x3   :  { %s16_s10 = sshll.u32 %s125_s9, 4  ;;  %s26_s12 = sshll.u32 %s126_s11, 4  ;;  %s17_s10 = int_to_ptr.vmem [resolvable:$true] %s16_s10  ;;  %s27_s12 = int_to_ptr.vmem [resolvable:$true] %s26_s12 }
   0x4   :  { %s67_s13 = scalar_lea.vmem %s17_s10, 32  ;;  %p72_p1 = scmp.lt.s32.totalorder %s17_s10, %s17_s10 }
   0x5   :  { %p68_p0 = scmp.ne.s32.totalorder %s17_s10, %s67_s13  ;;  %p73_p2 = scmp.lt.s32.totalorder %s67_s13, %s67_s13 }
   0x7   :  { %p74_p3 = por %p73_p2, %p72_p1 }
   0x9   :  { %p75_p4 = pnand %p74_p3, %p68_p0 }
   0xb   :  { %78 = shalt.err (!%p75_p4)
}
   0xc   :  { %19 = dma.hbm_to_vmem [thread:$0]  %s152_s0, 32, %s17_s10, [#allocation3]  }
   0xd   :  { %s87_s16 = scalar_lea.vmem %s27_s12, 32  ;;  %p92_p6 = scmp.lt.s32.totalorder %s27_s12, %s27_s12 }
   0xe   :  { %p88_p5 = scmp.ne.s32.totalorder %s27_s12, %s87_s16  ;;  %p93_p7 = scmp.lt.s32.totalorder %s87_s16, %s87_s16 }
  0x10   :  { %p94_p8 = por %p93_p7, %p92_p6 }
  0x12   :  { %p95_p9 = pnand %p94_p8, %p88_p5 }
  0x14   :  { %98 = shalt.err (!%p95_p9)
}
  0x15   :  { %29 = dma.hbm_to_vmem [thread:$0]  %s153_s1, 32, %s27_s12, [#allocation6]  }
  0x16   :  { %119 = dma.done.wait [#allocation3], 32  }
  0x17   :  { %120 = vsyncadd [#allocation3], 4294967264 }
  0x18   :  { %121 = dma.done.wait [#allocation6], 32  }
  0x19   :  { %122 = vsyncadd [#allocation6], 4294967264  ;;  %s127_s19 = smov [#allocation7]   ;;  %v36_v0 = vld [vmem:[#allocation2] sm:$0x3] }
  0x1a   :  { %s46_s20 = sshll.u32 %s127_s19, 4  ;;  %v37_v1 = vld [vmem:[#allocation5] sm:$0x3]  ;;  %s47_s20 = int_to_ptr.vmem [resolvable:$true] %s46_s20 }
  0x1b   :  { %v38_v2 = vadd.f32 %v37_v1, %v36_v0  ;;  %s99_s0 = scalar_lea.vmem %s47_s20, 32  ;;  %p104_p11 = scmp.lt.s32.totalorder %s47_s20, %s47_s20 }
  0x1c   :  { %p100_p10 = scmp.ne.s32.totalorder %s47_s20, %s99_s0  ;;  %p105_p12 = scmp.lt.s32.totalorder %s99_s0, %s99_s0 }
  0x1d   :  { %39 = vst [vmem:[#allocation7] sm:$0x3] %v38_v2 }
  0x1e   :  { %p106_p13 = por %p105_p12, %p104_p11 }
  0x20   :  { %p107_p0 = pnand %p106_p13, %p100_p10 }
  0x22   :  { %110 = shalt.err (!%p107_p0)
}
  0x23   :  { %49 = dma.vmem_to_hbm [thread:$0]  %s47_s20, 32, %s154_s2, [#allocation4]  }
  0x24   :  { %123 = dma.done.wait [#allocation4], 32  }
  0x25   :  { %124 = vsyncadd [#allocation4], 4294967264 }
  0x26   :  { %53 = vsyncpa [#allocation3], 1 }
  0x27   :  { %54 = vsyncpa [#allocation6], 1 }
  0x28   :  { %55 = vsyncpa [#allocation4], 1 }

</bundles_post_ra>
